<compile_context>
chip_gen: v7x
topology: tpu7x:2x2x1
jax: 0.10.0
libtpu: 0.0.40
codegen_flags: <defaults>
</compile_context>

<pallas_src>
import functools
import math

import jax
import jax.numpy as jnp
from jax import lax
from jax.experimental import pallas as pl
from jax.experimental.pallas import tpu as pltpu

LN_EPS = 1e-5      # torch.nn.LayerNorm default
_HALO = 8          # halo block rows (sublane aligned); covers (K-1)//stride <= 8


def _round_up(a, m):
    return (a + m - 1) // m * m


def _erf_poly(x):
    """Abramowitz & Stegun 7.1.26 erf approximation, |err| < 1.5e-7 (f32)."""
    p = 0.3275911
    a1, a2, a3, a4, a5 = (0.254829592, -0.284496736, 1.421413741,
                          -1.453152027, 1.061405429)
    sgn = jnp.where(x >= 0.0, 1.0, -1.0)
    ax = jnp.abs(x)
    t = 1.0 / (1.0 + p * ax)
    poly = ((((a5 * t + a4) * t + a3) * t + a2) * t + a1) * t
    return sgn * (1.0 - poly * jnp.exp(-ax * ax))


def _gelu(x, approximate):
    if approximate:   # tanh GELU -> single EUP tanh, nearly free in the epilogue
        c = math.sqrt(2.0 / math.pi)
        return 0.5 * x * (1.0 + jnp.tanh(c * (x + 0.044715 * x * x * x)))
    # "exact" erf GELU via polynomial (VPU + one EUP exp).
    return 0.5 * x * (1.0 + _erf_poly(x * (1.0 / math.sqrt(2.0))))


def _conv_ln_gelu_kernel(xm_ref, xh_ref, w_ref, p_ref, o_ref, *, gelu_approx):
    # xm_ref : (1, TT, D)      main x block, D = stride*C_in   (matmul dtype)
    # xh_ref : (1, HALO, D)    first rows AFTER the main block (same array x_r)
    # w_ref  : (Q, D, C_out)   per-row-shift weight groups     (matmul dtype)
    # p_ref  : (3, C_out)      f32: conv bias, LN gamma, LN beta
    # o_ref  : (1, C_out, TT)  output block, NCL layout        (output dtype)
    q_groups = w_ref.shape[0]

    # Conv1d == sum over q of a row-shifted (TT, D) @ (D, C_out) MXU matmul.
    acc = jnp.dot(xm_ref[0], w_ref[0], preferred_element_type=jnp.float32)
    for q in range(1, q_groups):
        xq = jnp.concatenate([xm_ref[0, q:, :], xh_ref[0, :q, :]], axis=0)
        acc = acc + jnp.dot(xq, w_ref[q], preferred_element_type=jnp.float32)

    y = acc + p_ref[0:1, :]                             # conv bias (f32)

    # LayerNorm over channels: two-pass variance, gamma folded into the scale.
    mean = jnp.mean(y, axis=-1, keepdims=True)
    cen = y - mean
    var = jnp.mean(cen * cen, axis=-1, keepdims=True)
    yn = cen * (lax.rsqrt(var + LN_EPS) * p_ref[1:2, :]) + p_ref[2:3, :]

    out = _gelu(yn, gelu_approx)
    # Emit (C_out, TT) directly -> NCL output; no separate XLA transpose pass.
    o_ref[0] = jnp.transpose(out).astype(o_ref.dtype)


def data2vec_audio_conv_layer(x, conv_w, conv_b, ln_g, ln_b, *, stride,
                              row_tile=1024, matmul_dtype=jnp.bfloat16,
                              out_dtype=None, gelu_approximate=None):
    """x: (B, C_in, L), conv_w: (C_out, C_in, K)  ->  (B, C_out, T_out) (NCL).

    matmul_dtype: MXU operand dtype (accumulation is always f32).
      jnp.bfloat16 (default) -> fast path (v5e/v6e/v7x MXUs are bf16 native).
      None / jnp.float32     -> PyTorch-faithful numerics.
    out_dtype: output dtype; defaults to the matmul dtype (halves writeback for bf16).
    gelu_approximate: None -> tanh GELU on the bf16 path, erf-accurate on f32.
    """
    B, C_in, L = x.shape
    C_out, _, K = conv_w.shape
    s = int(stride)
    if L < K:
        raise ValueError("sequence shorter than conv kernel")
    T_out = (L - K) // s + 1

    Q = -(-K // s)              # ceil(K / stride): number of row-shift groups
    q_max = Q - 1
    assert q_max <= _HALO, "conv kernel too large relative to stride for fixed halo"
    D = s * C_in                # contraction dim of each matmul
    # TODO(synk): layer-0 shape (C_in=1, K=10, stride=5 -> D=5) is lane-sparse /
    # MXU-starved; a dedicated VPU path for that layer would be more efficient.

    mm_dtype = jnp.dtype(x.dtype) if matmul_dtype is None else jnp.dtype(matmul_dtype)
    o_dtype = mm_dtype if out_dtype is None else jnp.dtype(out_dtype)
    if gelu_approximate is None:
        gelu_approximate = (mm_dtype == jnp.dtype(jnp.bfloat16))

    mm_item = mm_dtype.itemsize
    o_item = o_dtype.itemsize

    def _tile_bytes(tt):
        return (2 * tt * D * mm_item             # double-buffered main x block
                + 2 * _HALO * D * mm_item        # halo block
                + 2 * Q * D * C_out * mm_item    # weights (constant index map)
                + 2 * 3 * C_out * 4              # bias / gamma / beta
                + 2 * C_out * tt * o_item        # double-buffered output block
                + 3 * tt * C_out * 4)            # f32 acc + epilogue temporaries

    # ---- row-tile selection -------------------------------------------------
    assert row_tile % 128 == 0
    need = T_out + q_max
    if need > row_tile:
        TT = row_tile
        while TT > 128 and _tile_bytes(TT) > (40 << 20):
            TT //= 2                             # stays a multiple of 128
    else:
        TT = max(_HALO, _round_up(need, _HALO))  # single tile == full padded dim
    T_pad = _round_up(need, TT)
    nT = T_pad // TT

    # ---- phase-split input layout (one fused XLA relayout over x) ----------
    # x_r[b, m, r*C_in + ci] = x[b, ci, m*stride + r]; conv tap k = q*s + r then
    # only needs row-shifted contiguous reads x_r[t+q, :] inside the kernel.
    # TODO(synk): in the full multi-layer feature extractor, keep activations in
    # this layout between layers so this relayout is paid only once at layer 0.
    rows_total = T_pad + _HALO                   # +HALO so the halo spec never clamps
    L_need = rows_total * s
    xt = jnp.transpose(x, (0, 2, 1))             # (B, L, C_in)
    if L_need <= L:
        xt = xt[:, :L_need, :]
    else:
        xt = jnp.pad(xt, ((0, 0), (0, L_need - L), (0, 0)))
    x_r = xt.reshape(B, rows_total, D).astype(mm_dtype)

    # ---- weights: (Q, stride*C_in, C_out), zero-padded for taps k >= K ------
    w_p = jnp.pad(conv_w, ((0, 0), (0, 0), (0, Q * s - K)))     # (C_out, C_in, Q*s)
    w_stack = (jnp.transpose(w_p, (2, 1, 0))                    # (Q*s, C_in, C_out)
               .reshape(Q, D, C_out).astype(mm_dtype))

    params = jnp.stack([conv_b, ln_g, ln_b], axis=0).astype(jnp.float32)

    halo_step = TT // _HALO
    grid = (B, nT)
    kernel = functools.partial(_conv_ln_gelu_kernel,
                               gelu_approx=bool(gelu_approximate))

    flops = 2 * B * T_pad * D * C_out * Q
    bytes_accessed = (B * rows_total * D * mm_item + Q * D * C_out * mm_item
                      + B * C_out * T_pad * o_item + 3 * C_out * 4)
    vmem_limit = int(min(max(_tile_bytes(TT) + (8 << 20), 32 << 20), 48 << 20))

    out = pl.pallas_call(
        kernel,
        out_shape=jax.ShapeDtypeStruct((B, C_out, T_pad), o_dtype),
        grid=grid,
        in_specs=[
            # main (1, TT, D) block of x_r
            pl.BlockSpec((1, TT, D), lambda b, t: (b, t, 0)),
            # halo: first _HALO rows following the main block (same array x_r);
            # x_r carries _HALO extra padded rows so this index is always valid.
            pl.BlockSpec((1, _HALO, D), lambda b, t: (b, (t + 1) * halo_step, 0)),
            # TODO(synk): pl.Buffered(1) on the two constant specs below (weights,
            # params) to halve their VMEM once single-buffering is confirmed.
            pl.BlockSpec((Q, D, C_out), lambda b, t: (0, 0, 0)),
            pl.BlockSpec((3, C_out), lambda b, t: (0, 0)),
        ],
        out_specs=pl.BlockSpec((1, C_out, TT), lambda b, t: (b, 0, t)),
        compiler_params=pltpu.CompilerParams(
            dimension_semantics=("parallel", "parallel"),
            vmem_limit_bytes=vmem_limit,
        ),
        cost_estimate=pl.CostEstimate(
            flops=flops,
            transcendentals=B * T_pad * C_out,
            bytes_accessed=bytes_accessed,
        ),
    )(x_r, x_r, w_stack, params)

    return out[:, :, :T_out]                      # (B, C_out, T_out), NCL like PyTorch


def _reference(x, conv_w, conv_b, ln_g, ln_b, *, stride):
    """Pure-JAX reference mirroring the PyTorch forward."""
    y = lax.conv_general_dilated(
        x, conv_w, window_strides=(stride,), padding="VALID",
        dimension_numbers=("NCH", "OIH", "NCH"),
        precision=lax.Precision.HIGHEST,
    ) + conv_b[None, :, None]                     # (B, C_out, T_out)
    yt = jnp.transpose(y, (0, 2, 1))              # (B, T_out, C_out)
    mean = jnp.mean(yt, axis=-1, keepdims=True)
    var = jnp.mean((yt - mean) ** 2, axis=-1, keepdims=True)
    yn = (yt - mean) * lax.rsqrt(var + LN_EPS) * ln_g + ln_b
    yn = jnp.transpose(yn, (0, 2, 1))
    return jax.nn.gelu(yn, approximate=False)


if __name__ == "__main__":
    # Synthetic config (layer_id=1 style): conv_dim=(4, 8), kernel=3, stride=2, bias=True
    B, C_in, L = 2, 4, 16
    C_out, K, stride = 8, 3, 2

    key = jax.random.PRNGKey(0)
    kx, kw, kb, kg, kbeta = jax.random.split(key, 5)

    x = jax.random.normal(kx, (B, C_in, L), dtype=jnp.float32)
    conv_w = 0.2 * jax.random.normal(kw, (C_out, C_in, K), dtype=jnp.float32)
    conv_b = 0.1 * jax.random.normal(kb, (C_out,), dtype=jnp.float32)
    ln_g = 1.0 + 0.05 * jax.random.normal(kg, (C_out,), dtype=jnp.float32)
    ln_b = 0.05 * jax.random.normal(kbeta, (C_out,), dtype=jnp.float32)

    T_out = (L - K) // stride + 1
    ref = _reference(x, conv_w, conv_b, ln_g, ln_b, stride=stride)

    # PyTorch-faithful path: f32 matmul operands, erf-accurate GELU, f32 output.
    run_f32 = jax.jit(functools.partial(
        data2vec_audio_conv_layer, stride=stride, matmul_dtype=jnp.float32))
    out_f32 = jax.block_until_ready(run_f32(x, conv_w, conv_b, ln_g, ln_b))
    assert out_f32.shape == (B, C_out, T_out), out_f32.shape
    err_f32 = float(jnp.max(jnp.abs(out_f32 - ref)))
    assert err_f32 < 5e-3, err_f32

    # Default fast path: bf16 matmul operands + bf16 output, tanh GELU.
    run_fast = jax.jit(functools.partial(data2vec_audio_conv_layer, stride=stride))
    out_fast = jax.block_until_ready(run_fast(x, conv_w, conv_b, ln_g, ln_b))
    assert out_fast.shape == (B, C_out, T_out), out_fast.shape
    err_fast = float(jnp.max(jnp.abs(out_fast.astype(jnp.float32) - ref)))
    assert err_fast < 0.25, err_fast

    print("KERNEL_OK")
</pallas_src>

<mosaic_0001>
module attributes {stable_mosaic.version = 11 : i64} {
  func.func @_conv_ln_gelu_kernel(%arg0: i32, %arg1: i32, %arg2: memref<1x8x8xf32, #tpu.memory_space<vmem>>, %arg3: memref<1x8x8xf32, #tpu.memory_space<vmem>>, %arg4: memref<2x8x8xf32, #tpu.memory_space<vmem>>, %arg5: memref<3x8xf32, #tpu.memory_space<vmem>>, %arg6: memref<1x8x8xf32, #tpu.memory_space<vmem>>) attributes {dimension_semantics = [#tpu.dimension_semantics<parallel>, #tpu.dimension_semantics<parallel>], iteration_bounds = array<i64: 2, 1>, scalar_prefetch = 0 : i64, scratch_operands = 0 : i64, tpu.core_type = #tpu.core_type<tc>, window_params = [{transform_indices = @transform_0, window_bounds = array<i64: 1, 8, 8>}, {transform_indices = @transform_1, window_bounds = array<i64: 1, 8, 8>}, {pipeline_mode = #tpu.pipeline_mode<synchronous>, transform_indices = @transform_2, window_bounds = array<i64: 2, 8, 8>}, {pipeline_mode = #tpu.pipeline_mode<synchronous>, transform_indices = @transform_3, window_bounds = array<i64: 3, 8>}, {transform_indices = @transform_4, window_bounds = array<i64: 1, 8, 8>}]} {
    %c0 = arith.constant 0 : index
    %c0_0 = arith.constant 0 : index
    %c0_1 = arith.constant 0 : index
    %0 = vector.load %arg2[%c0, %c0_0, %c0_1] : memref<1x8x8xf32, #tpu.memory_space<vmem>>, vector<1x8x8xf32>
    %1 = vector.shape_cast %0 : vector<1x8x8xf32> to vector<8x8xf32>
    %c0_2 = arith.constant 0 : index
    %c0_3 = arith.constant 0 : index
    %c0_4 = arith.constant 0 : index
    %2 = vector.load %arg4[%c0_2, %c0_3, %c0_4] : memref<2x8x8xf32, #tpu.memory_space<vmem>>, vector<1x8x8xf32>
    %3 = vector.shape_cast %2 : vector<1x8x8xf32> to vector<8x8xf32>
    %cst = arith.constant dense<0.000000e+00> : vector<8x8xf32>
    %4 = tpu.matmul %1, %3, %cst {dimension_numbers = #tpu.dot_dimension_numbers<[1], [0], [0], [1], [0, 0, 1, 1], [], []>} : vector<8x8xf32>, vector<8x8xf32>, vector<8x8xf32> -> vector<8x8xf32>
    %c0_5 = arith.constant 0 : index
    %c1 = arith.constant 1 : index
    %c0_6 = arith.constant 0 : index
    %5 = vector.load %arg2[%c0_5, %c1, %c0_6] : memref<1x8x8xf32, #tpu.memory_space<vmem>>, vector<1x7x8xf32>
    %6 = vector.shape_cast %5 : vector<1x7x8xf32> to vector<7x8xf32>
    %c0_7 = arith.constant 0 : index
    %c0_8 = arith.constant 0 : index
    %c0_9 = arith.constant 0 : index
    %7 = vector.load %arg3[%c0_7, %c0_8, %c0_9] : memref<1x8x8xf32, #tpu.memory_space<vmem>>, vector<1x1x8xf32>
    %8 = vector.shape_cast %7 : vector<1x1x8xf32> to vector<1x8xf32>
    %9 = tpu.concatenate %6, %8 in 0 : vector<7x8xf32>, vector<1x8xf32> -> vector<8x8xf32>
    %c1_10 = arith.constant 1 : index
    %c0_11 = arith.constant 0 : index
    %c0_12 = arith.constant 0 : index
    %10 = vector.load %arg4[%c1_10, %c0_11, %c0_12] : memref<2x8x8xf32, #tpu.memory_space<vmem>>, vector<1x8x8xf32>
    %11 = vector.shape_cast %10 : vector<1x8x8xf32> to vector<8x8xf32>
    %cst_13 = arith.constant dense<0.000000e+00> : vector<8x8xf32>
    %12 = tpu.matmul %9, %11, %cst_13 {dimension_numbers = #tpu.dot_dimension_numbers<[1], [0], [0], [1], [0, 0, 1, 1], [], []>} : vector<8x8xf32>, vector<8x8xf32>, vector<8x8xf32> -> vector<8x8xf32>
    %13 = arith.addf %4, %12 : vector<8x8xf32>
    %c0_14 = arith.constant 0 : index
    %c0_15 = arith.constant 0 : index
    %14 = vector.load %arg5[%c0_14, %c0_15] : memref<3x8xf32, #tpu.memory_space<vmem>>, vector<1x8xf32>
    %15 = vector.broadcast %14 : vector<1x8xf32> to vector<8x8xf32>
    %16 = arith.addf %13, %15 : vector<8x8xf32>
    %cst_16 = arith.constant dense<0.000000e+00> : vector<8xf32>
    %17 = vector.multi_reduction <add>, %16, %cst_16 [1] : vector<8x8xf32> to vector<8xf32>
    %18 = vector.shape_cast %17 : vector<8xf32> to vector<8x1xf32>
    %cst_17 = arith.constant 8.000000e+00 : f32
    %19 = vector.broadcast %cst_17 : f32 to vector<8x1xf32>
    %20 = arith.divf %18, %19 : vector<8x1xf32>
    %21 = vector.broadcast %20 : vector<8x1xf32> to vector<8x8xf32>
    %22 = arith.subf %16, %21 : vector<8x8xf32>
    %23 = arith.mulf %22, %22 : vector<8x8xf32>
    %cst_18 = arith.constant dense<0.000000e+00> : vector<8xf32>
    %24 = vector.multi_reduction <add>, %23, %cst_18 [1] : vector<8x8xf32> to vector<8xf32>
    %25 = vector.shape_cast %24 : vector<8xf32> to vector<8x1xf32>
    %cst_19 = arith.constant 8.000000e+00 : f32
    %26 = vector.broadcast %cst_19 : f32 to vector<8x1xf32>
    %27 = arith.divf %25, %26 : vector<8x1xf32>
    %cst_20 = arith.constant 9.99999974E-6 : f32
    %28 = vector.broadcast %cst_20 : f32 to vector<8x1xf32>
    %29 = arith.addf %27, %28 : vector<8x1xf32>
    %30 = math.rsqrt %29 : vector<8x1xf32>
    %c1_21 = arith.constant 1 : index
    %c0_22 = arith.constant 0 : index
    %31 = vector.load %arg5[%c1_21, %c0_22] : memref<3x8xf32, #tpu.memory_space<vmem>>, vector<1x8xf32>
    %32 = vector.broadcast %30 : vector<8x1xf32> to vector<8x8xf32>
    %33 = vector.broadcast %31 : vector<1x8xf32> to vector<8x8xf32>
    %34 = arith.mulf %32, %33 : vector<8x8xf32>
    %35 = arith.mulf %22, %34 : vector<8x8xf32>
    %c2 = arith.constant 2 : index
    %c0_23 = arith.constant 0 : index
    %36 = vector.load %arg5[%c2, %c0_23] : memref<3x8xf32, #tpu.memory_space<vmem>>, vector<1x8xf32>
    %37 = vector.broadcast %36 : vector<1x8xf32> to vector<8x8xf32>
    %38 = arith.addf %35, %37 : vector<8x8xf32>
    %cst_24 = arith.constant 5.000000e-01 : f32
    %39 = vector.broadcast %cst_24 : f32 to vector<8x8xf32>
    %40 = arith.mulf %39, %38 : vector<8x8xf32>
    %cst_25 = arith.constant 0.707106769 : f32
    %41 = vector.broadcast %cst_25 : f32 to vector<8x8xf32>
    %42 = arith.mulf %38, %41 : vector<8x8xf32>
    %cst_26 = arith.constant 0.000000e+00 : f32
    %43 = vector.broadcast %cst_26 : f32 to vector<8x8xf32>
    %44 = arith.cmpf oge, %42, %43 : vector<8x8xf32>
    %cst_27 = arith.constant 1.000000e+00 : f32
    %cst_28 = arith.constant -1.000000e+00 : f32
    %45 = vector.broadcast %cst_27 : f32 to vector<8x8xf32>
    %46 = vector.broadcast %cst_28 : f32 to vector<8x8xf32>
    %47 = arith.select %44, %45, %46 : vector<8x8xi1>, vector<8x8xf32>
    %48 = math.absf %42 : vector<8x8xf32>
    %cst_29 = arith.constant 0.327591091 : f32
    %49 = vector.broadcast %cst_29 : f32 to vector<8x8xf32>
    %50 = arith.mulf %49, %48 : vector<8x8xf32>
    %cst_30 = arith.constant 1.000000e+00 : f32
    %51 = vector.broadcast %cst_30 : f32 to vector<8x8xf32>
    %52 = arith.addf %51, %50 : vector<8x8xf32>
    %cst_31 = arith.constant 1.000000e+00 : f32
    %53 = vector.broadcast %cst_31 : f32 to vector<8x8xf32>
    %54 = arith.divf %53, %52 : vector<8x8xf32>
    %cst_32 = arith.constant 1.06140542 : f32
    %55 = vector.broadcast %cst_32 : f32 to vector<8x8xf32>
    %56 = arith.mulf %55, %54 : vector<8x8xf32>
    %cst_33 = arith.constant -1.45315206 : f32
    %57 = vector.broadcast %cst_33 : f32 to vector<8x8xf32>
    %58 = arith.addf %56, %57 : vector<8x8xf32>
    %59 = arith.mulf %58, %54 : vector<8x8xf32>
    %cst_34 = arith.constant 1.42141378 : f32
    %60 = vector.broadcast %cst_34 : f32 to vector<8x8xf32>
    %61 = arith.addf %59, %60 : vector<8x8xf32>
    %62 = arith.mulf %61, %54 : vector<8x8xf32>
    %cst_35 = arith.constant -0.284496725 : f32
    %63 = vector.broadcast %cst_35 : f32 to vector<8x8xf32>
    %64 = arith.addf %62, %63 : vector<8x8xf32>
    %65 = arith.mulf %64, %54 : vector<8x8xf32>
    %cst_36 = arith.constant 0.254829586 : f32
    %66 = vector.broadcast %cst_36 : f32 to vector<8x8xf32>
    %67 = arith.addf %65, %66 : vector<8x8xf32>
    %68 = arith.mulf %67, %54 : vector<8x8xf32>
    %cst_37 = arith.constant 0.000000e+00 : f32
    %69 = vector.broadcast %cst_37 : f32 to vector<8x8xf32>
    %70 = arith.subf %69, %48 : vector<8x8xf32>
    %71 = arith.mulf %70, %48 : vector<8x8xf32>
    %72 = math.exp %71 : vector<8x8xf32>
    %73 = arith.mulf %68, %72 : vector<8x8xf32>
    %cst_38 = arith.constant 1.000000e+00 : f32
    %74 = vector.broadcast %cst_38 : f32 to vector<8x8xf32>
    %75 = arith.subf %74, %73 : vector<8x8xf32>
    %76 = arith.mulf %47, %75 : vector<8x8xf32>
    %cst_39 = arith.constant 1.000000e+00 : f32
    %77 = vector.broadcast %cst_39 : f32 to vector<8x8xf32>
    %78 = arith.addf %77, %76 : vector<8x8xf32>
    %79 = arith.mulf %40, %78 : vector<8x8xf32>
    %80 = tpu.transpose %79, [1, 0] : vector<8x8xf32> -> vector<8x8xf32>
    %c0_40 = arith.constant 0 : index
    %c0_41 = arith.constant 0 : index
    %c0_42 = arith.constant 0 : index
    %81 = vector.load %arg6[%c0_40, %c0_41, %c0_42] : memref<1x8x8xf32, #tpu.memory_space<vmem>>, vector<1x8x8xf32>
    %82 = vector.shape_cast %81 : vector<1x8x8xf32> to vector<8x8xf32>
    %83 = vector.shape_cast %80 : vector<8x8xf32> to vector<1x8x8xf32>
    tpu.vector_store %arg6[%c0_40, %c0_41, %c0_42], %83 {strides = array<i32>} : memref<1x8x8xf32, #tpu.memory_space<vmem>>, vector<1x8x8xf32>,
    return
  }
  func.func @transform_0(%arg0: i32, %arg1: i32) -> (i32, i32, i32) {
    %c0_i32 = arith.constant 0 : i32
    %c0_i32_0 = arith.constant 0 : i32
    return %arg0, %arg1, %c0_i32 : i32, i32, i32
  }
  func.func @transform_1(%arg0: i32, %arg1: i32) -> (i32, i32, i32) {
    %c1_i32 = arith.constant 1 : i32
    %0 = arith.addi %arg1, %c1_i32 : i32
    %c1_i32_0 = arith.constant 1 : i32
    %1 = arith.muli %0, %c1_i32_0 : i32
    %c0_i32 = arith.constant 0 : i32
    %c0_i32_1 = arith.constant 0 : i32
    return %arg0, %1, %c0_i32 : i32, i32, i32
  }
  func.func @transform_2(%arg0: i32, %arg1: i32) -> (i32, i32, i32) {
    %c0_i32 = arith.constant 0 : i32
    %c0_i32_0 = arith.constant 0 : i32
    %c0_i32_1 = arith.constant 0 : i32
    %c0_i32_2 = arith.constant 0 : i32
    return %c0_i32, %c0_i32_0, %c0_i32_1 : i32, i32, i32
  }
  func.func @transform_3(%arg0: i32, %arg1: i32) -> (i32, i32) {
    %c0_i32 = arith.constant 0 : i32
    %c0_i32_0 = arith.constant 0 : i32
    %c0_i32_1 = arith.constant 0 : i32
    return %c0_i32, %c0_i32_0 : i32, i32
  }
  func.func @transform_4(%arg0: i32, %arg1: i32) -> (i32, i32, i32) {
    %c0_i32 = arith.constant 0 : i32
    %c0_i32_0 = arith.constant 0 : i32
    return %arg0, %c0_i32, %arg1 : i32, i32, i32
  }
}

</mosaic_0001>

<bundles_post_ra>
// kernel: data2vec_audio_conv_layer.1
= control target key start
LH: loop header
LB: loop body
LE: loop exit
PB: predicated region body
PF: predicated region fallthrough
CT: control target
= control target key end

     0   :  { %s731_s15 = smov 0   ;;  %s733_s16 = smov 0   ;;  %s791_s0 = inlined_call_operand.vmem [shape: f32[2,16,8], index: 0, kind: input, shape index: {}, may-alias: {0,1}]   ;;  %s792_s1 = inlined_call_operand.vmem [shape: f32[2,16,8], index: 1, kind: input, shape index: {}, may-alias: {0,1}]   ;;  %s793_s2 = inlined_call_operand.vmem [shape: f32[2,8,8], index: 2, kind: input, shape index: {}]   ;;  %s794_s3 = inlined_call_operand.vmem [shape: f32[3,8], index: 3, kind: input, shape index: {}]   ;;  %s795_s4 = inlined_call_operand.vmem [shape: f32[2,8,8], index: 4, kind: output, shape index: {}]  }
   0x1   :  { %s735_s17 = smov 0  }
   0x2 LB: > { %s26_s18 = sadd.s32 1, %s697_s16  ;;  %p614_p0 = scmp.ge.s32.totalorder %s701_s17, 1  ;;  %s701_s17 = sphi %s735_s17, %s14_s17   ;;  %s697_s16 = sphi %s733_s16, %s797_s16   ;;  %s693_s15 = sphi %s731_s15, %s796_s15  }
   0x3   : > { %p28_p1 = scmp.ge.s32.totalorder %s26_s18, 2  ;;  %p200_p2 = scmp.lt.s32.totalorder %s701_s17, 3 }
   0x5   : > { %s799_s18 = smov (%p28_p1, %s26_s18), 0  ;;  %p201_p3 = pnand %p614_p0, %p200_p2 }
   0x6   : > { %v266_v0 = vld [vmem:[%s793_s2] sm:$0xff] (!%p201_p3)  ;;  %v620_v1 = vld [vmem:[%s793_s2 + $0x8] sm:$0xff] (!%p201_p3)  ;;  %p240_p4 = scmp.lt.s32.totalorder (!%p201_p3), %s693_s15, 1  ;;  %v703_v2 = vmov (!%p201_p3), 0.0   ;;  %vm704_vm0 = vmmov (!%p201_p3), 0   ;;  %vm276_vm1 = vcmask (!%p201_p3), 64512  }
   0x7   : > { %204 = sbr.rel (%p201_p3) target bundleno = 728 (0x2d8), region = 36  ;;  %641 = vmatprep.subr.mxu1 (!%p201_p3), %v703_v2  ;;  %636 = vmatprep.subr.mxu0 (!%p201_p3), %v703_v2  ;;  %vm272_vm2 = vcmask (!%p201_p3), 1046528   ;;  %v623_v11 = vld [vmem:[%s794_s3] ss:$0 sm:$0xff] (!%p201_p3)  ;;  %v624_v24 = vld [vmem:[%s794_s3 + $0x1] ss:$0 sm:$0xff] (!%p201_p3) }
   0x8   : > { %642 = vmatpush3.msra.mxu1 (!%p201_p3), %v266_v0  ;;  %643 = vmatprep.mubr.msk.f32.mxu1 (!%p201_p3), %vm704_vm0, %v703_v2  ;;  %v625_v27 = vld [vmem:[%s794_s3 + $0x2] ss:$0 sm:$0xff] (!%p201_p3)  ;;  %v705_v50 = vmov (!%p201_p3), -1.0  }
   0x9   : > { %637 = vmatpush3.msra.mxu0 (!%p201_p3), %v620_v1  ;;  %638 = vmatprep.mubr.msk.f32.mxu0 (!%p201_p3), %vm704_vm0, %v703_v2 }
   0xe   : > { %s801_s15 = smov (!%p240_p4, %s693_s15), 1 }
   0xf   : > { %s628_s23 = sshll.u32 %s801_s15, 4  ;;  %s619_s11 = sshll.u32 %s801_s15, 3 }
  0x10   : > { %s247_s26 = scalar_lea.vmem %s791_s0, %s628_s23  ;;  %s630_s27 = sadd.s32 8, %s628_s23 }
  0x11   : > { %s256_s30 = scalar_lea.vmem %s792_s1, %s630_s27  ;;  %v265_v3 = vld [vmem:[%s247_s26] sm:$0xff]  ;;  %s264_s14 = scalar_lea.vmem %s795_s4, %s619_s11 }
  0x12   : > { %v267_v4 = vld [vmem:[%s247_s26 + $0x1] sm:$0x7f]  ;;  %v268_v5 = vld [vmem:[%s256_s30] sm:$0x1]  ;;  %644 = vmatmul.mubr.msk.f32.vlgmr.msra.gmra.mrb[0].mxu1 %vm276_vm1, %v265_v3 }
  0x13   : > { %v270_v6 = vrot.slane %v268_v5, 1 }
  0x15   : > { %v273_v7 = vsel %vm272_vm2, %v267_v4, %v270_v6 }
  0x16   : > { %639 = vmatmul.mubr.msk.f32.vlgmr.msra.gmra.mrb[0].mxu0 %vm276_vm1, %v273_v7 }
  0xe5   : > { %v419_v8 = vpop.f32.mrb[0].mxu1 }
  0xe6   : > { %v645_v9 = vpop.f32.mrb[1].mxu1 }
  0xe9   : > { %v346_v10 = vpop.f32.mrb[0].mxu0 }
  0xea   : > { %v420_v12 = vadd.f32 %v419_v8, %v346_v10  ;;  %v640_v13 = vpop.f32.mrb[1].mxu0 }
  0xec   : > { %v428_v14 = vadd.f32 %v623_v11, %v420_v12 }
  0xee   : > { %v429_v15 = vsel %vm276_vm1, %v428_v14, 0.0 }
  0xef   : > { %430 = vadd.xlane.f32.xlu0 %v429_v15 }
 0x17c   : > { %v431_v16 = vpop.xlane.xlu0 %430 }
 0x17d   : > { %v433_v17 = vmul.f32 0.125, %v431_v16 }
 0x17f   : > { %v434_v18 = vsub.f32 %v428_v14, %v433_v17 }
 0x181   : > { %v435_v19 = vmul.f32 %v434_v18, %v434_v18 }
 0x183   : > { %v436_v20 = vsel %vm276_vm1, %v435_v19, 0.0 }
 0x184   : > { %437 = vadd.xlane.f32.xlu0 %v436_v20 }
 0x211   : > { %v438_v21 = vpop.xlane.xlu0 %437 }
 0x212   : > { %v439_v22 = vmul.f32 0.125, %v438_v21 }
 0x214   : > { %v440_v23 = vadd.f32 1e-05, %v439_v22 }
 0x216   : > { %673 = vrsqrt.f32 %v440_v23 }
 0x220   : > { %v674_v25 = vpop.eup %673 }
 0x221   : > { %v447_v26 = vmul.f32 %v674_v25, %v624_v24 }
 0x223   : > { %v448_v28 = vmul.f32 %v447_v26, %v434_v18 }
 0x225   : > { %v454_v29 = vadd.f32 %v625_v27, %v448_v28 }
 0x227   : > { %v456_v30 = vmul.f32 0.70710677, %v454_v29  ;;  %v455_v53 = vmul.f32 0.5, %v454_v29 }
 0x229   : > { %v459_v31 = vand.u32 2147483647, %v456_v30  ;;  %vm457_vm3 = vcmp.ge.f32.partialorder %v456_v30, 0.0 }
 0x22a   : > { %v458_v51 = vsel %vm457_vm3, 1.0, %v705_v50 }
 0x22b   : > { %v460_v32 = vmul.f32 0.3275911, %v459_v31  ;;  %v473_v34 = vsub.f32 0.0, %v459_v31 }
 0x22d   : > { %v461_v33 = vadd.f32 1.0, %v460_v32  ;;  %v474_v36 = vmul.f32 %v473_v34, %v459_v31 }
 0x22f   : > { %675 = vrcp.f32 %v461_v33  ;;  %v475_v39 = vmul.f32 1.442695, %v474_v36 }
 0x231   : > { %677 = vpow2.f32 %v475_v39 }
 0x239   : > { %v676_v35 = vpop.eup %675 }
 0x23a   : > { %v464_v37 = vmul.f32 1.0614054, %v676_v35 }
 0x23b   : > { %v678_v47 = vpop.eup %677 }
 0x23c   : > { %v465_v38 = vadd.f32 -1.4531521, %v464_v37 }
 0x23e   : > { %v466_v40 = vmul.f32 %v676_v35, %v465_v38 }
 0x240   : > { %v467_v41 = vadd.f32 1.4214138, %v466_v40 }
 0x242   : > { %v468_v42 = vmul.f32 %v676_v35, %v467_v41 }
 0x244   : > { %v469_v43 = vadd.f32 -0.28449672, %v468_v42 }
 0x246   : > { %v470_v44 = vmul.f32 %v676_v35, %v469_v43 }
 0x248   : > { %v471_v45 = vadd.f32 0.2548296, %v470_v44 }
 0x24a   : > { %v472_v46 = vmul.f32 %v676_v35, %v471_v45 }
 0x24c   : > { %v477_v48 = vmul.f32 %v678_v47, %v472_v46 }
 0x24e   : > { %v478_v49 = vsub.f32 1.0, %v477_v48 }
 0x250   : > { %v479_v52 = vmul.f32 %v478_v49, %v458_v51 }
 0x252   : > { %v480_v54 = vadd.f32 1.0, %v479_v52 }
 0x254   : > { %v481_v55 = vmul.f32 %v480_v54, %v455_v53 }
 0x256   : > { %482 = vxpose.xlu1.b32.start.end [1/1] (short) (narrow) %v481_v55, 8 }
 0x2d6   : > { %v498_v56 = vpop.trf.xlu1 }
 0x2d7   : > { %514 = vst.msk [vmem:[%s264_s14] sm:$0xff] %vm276_vm1, %v498_v56 }
 0x2d8 PF: > { %s14_s17 = sadd.s32 1, %s701_s17   ;;  %s796_s15 = smov %s697_s16 }
 0x2d9   : > { %p11_p5 = scmp.ge.s32.totalorder %s14_s17, 4   ;;  %s797_s16 = smov %s799_s18 }
 0x2db   :  { %13 = sbr.rel (!%p11_p5) target bundleno = 2 (0x2), region = 70 }

</bundles_post_ra>
